<compile_context>
chip_gen: v7x
topology: tpu7x:2x2x1
jax: 0.10.0
libtpu: 0.0.40
codegen_flags: <defaults>
</compile_context>

<pallas_src>
import math

import jax
import jax.numpy as jnp
import numpy as np
from jax.experimental import pallas as pl
from jax.experimental.pallas import tpu as pltpu

_LANE = 128


# ----------------------------------------------------------------------------
# Parameter setup (glue, plain numpy) — mirrors get_dct_filter in the module.
# ----------------------------------------------------------------------------
def _build_filter(pos, freq, POS):
    result = math.cos(math.pi * freq * (pos + 0.5) / POS) / math.sqrt(POS)
    if freq == 0:
        return result
    return result * math.sqrt(2)


def get_dct_filter(tile_size_x, tile_size_y, mapper_x, mapper_y, channel):
    assert len(mapper_x) == len(mapper_y)
    assert channel % len(mapper_x) == 0
    dct_filter = np.zeros((channel, tile_size_x, tile_size_y), dtype=np.float32)
    c_part = channel // len(mapper_x)
    for i, (u_x, v_y) in enumerate(zip(mapper_x, mapper_y)):
        for t_x in range(tile_size_x):
            for t_y in range(tile_size_y):
                dct_filter[i * c_part:(i + 1) * c_part, t_x, t_y] = (
                    _build_filter(t_x, u_x, tile_size_x)
                    * _build_filter(t_y, v_y, tile_size_y)
                )
    return jnp.asarray(dct_filter)


# ----------------------------------------------------------------------------
# Pad-aware VMEM / tiling plan
# ----------------------------------------------------------------------------
def _round_up(v, m):
    return ((v + m - 1) // m) * m


def _sublane_multiple(dtype):
    # f32 -> 8 rows, bf16 -> 16, int8/fp8 -> 32 rows per (sublane, lane) tile.
    return max(8, 32 // np.dtype(dtype).itemsize)


def _padded_tile_bytes(rows, cols, dtype):
    """VMEM bytes of a (rows, cols) tile after sublane/lane padding."""
    itemsize = np.dtype(dtype).itemsize
    return (_round_up(rows, _sublane_multiple(dtype))
            * _round_up(cols, _LANE) * itemsize)


def _vmem_capacity_bytes():
    try:
        cap = int(pltpu.get_tpu_info().vmem_capacity_bytes)
        if cap > 0:
            return cap
    except Exception:
        pass
    return 64 << 20  # conservative fallback (v7x-sized) — safe on every gen


def _choose_tn(n, per_sample_bytes, target_block_bytes, min_steps=4):
    """Batch tile TN: largest padded block under target; keep >= min_steps grid
    steps when N allows (v7x megacore split of the "parallel" batch axis);
    keep TN == N or TN % 8 == 0 so the (TN, C) output block stays layout-safe
    and sublane-dense."""
    tn = max(1, int(target_block_bytes // max(1, per_sample_bytes)))
    if n >= 8 * min_steps:
        tn = min(tn, -(-n // min_steps))
    if tn >= n:
        return n
    if tn >= 8:
        return (tn // 8) * 8
    return 8 if n >= 8 else n


def _plan(n, c, slab_rows, slab_cols, x_dtype, target_block_bytes):
    """Returns (tn, vmem_limit_bytes) using tile-padded byte accounting."""
    vmem_cap = _vmem_capacity_bytes()
    vmem_budget = (vmem_cap * 3) // 4          # headroom, esp. on 64 MiB v7x
    if target_block_bytes is None:
        # Bigger blocks amortize the ~0.35us/step overhead; scale to the part.
        target_block_bytes = (16 << 20) if vmem_cap >= (96 << 20) else (8 << 20)

    per_sample = _padded_tile_bytes(slab_rows, slab_cols, x_dtype)   # one x slab
    w_bytes = _padded_tile_bytes(slab_rows, slab_cols, x_dtype)      # weight slab
    # Room left for the double-buffered x blocks after the (double-buffered)
    # resident weight and a small margin.  (pipeline_mode=pl.Buffered(1) on the
    # weight would save one copy; marginal, so we simply account for both.)
    x_room = max(per_sample, (vmem_budget - 2 * w_bytes - (2 << 20)) // 2)
    tn = _choose_tn(n, per_sample, min(target_block_bytes, x_room))

    out_bytes = _padded_tile_bytes(tn, c, x_dtype)
    needed = 2 * tn * per_sample + 2 * w_bytes + 2 * out_bytes + (2 << 20)
    vmem_limit = int(max(16 << 20, min(needed, vmem_cap)))
    return tn, vmem_limit


# ----------------------------------------------------------------------------
# Pallas kernels: elementwise multiply + spatial reduction (the hot path).
# ----------------------------------------------------------------------------
def _dct_kernel_nchw(x_ref, w_ref, o_ref):
    # x_ref: (TN, C, HW)   w_ref: (C, HW)   o_ref: (TN, C)
    # Product in the activation dtype (bf16 stays bf16 on v6e/v7x VALUs),
    # accumulation in f32, explicit cast to the output dtype.
    prod = x_ref[...] * w_ref[...]
    o_ref[...] = jnp.sum(prod, axis=-1, dtype=jnp.float32).astype(o_ref.dtype)


def _dct_kernel_nhwc(x_ref, w_ref, o_ref):
    # x_ref: (TN, HW, C)   w_ref: (HW, C)   o_ref: (TN, C)
    # Reduction runs along sublanes (VPU adds + a short sublane finish, no
    # cross-lane XLU work); output block is lane-dense for C >= 128.
    prod = x_ref[...] * w_ref[...]
    o_ref[...] = jnp.sum(prod, axis=1, dtype=jnp.float32).astype(o_ref.dtype)


# ----------------------------------------------------------------------------
# Wrappers
# ----------------------------------------------------------------------------
def multi_spectral_dct(x, weight, *, target_block_bytes=None):
    """Module-native NCHW path.  x: (N, C, H, W), weight: (C, H, W) -> (N, C)."""
    assert x.ndim == 4, "x must been 4 dimensions, but got " + str(x.ndim)
    N, C, H, W = x.shape
    HW = H * W
    assert weight.shape == (C, H, W)

    x_flat = x.reshape(N, C, HW)                       # metadata-only reshape
    w_flat = weight.reshape(C, HW).astype(x.dtype)     # tiny one-time cast

    tn, vmem_limit = _plan(N, C, C, HW, x.dtype, target_block_bytes)
    grid = (pl.cdiv(N, tn),)

    itemsize = np.dtype(x.dtype).itemsize
    cost = pl.CostEstimate(
        flops=2 * N * C * HW,
        transcendentals=0,
        bytes_accessed=N * C * HW * itemsize + C * HW * itemsize + N * C * itemsize,
    )

    return pl.pallas_call(
        _dct_kernel_nchw,
        out_shape=jax.ShapeDtypeStruct((N, C), x.dtype),
        grid=grid,
        in_specs=[
            pl.BlockSpec((tn, C, HW), lambda i: (i, 0, 0)),
            pl.BlockSpec((C, HW), lambda i: (0, 0)),   # weight resident across grid
        ],
        out_specs=pl.BlockSpec((tn, C), lambda i: (i, 0)),
        compiler_params=pltpu.CompilerParams(
            dimension_semantics=("parallel",),
            vmem_limit_bytes=vmem_limit,
        ),
        cost_estimate=cost,
    )(x_flat, w_flat)


def multi_spectral_dct_nhwc(x_nhwc, weight, *, target_block_bytes=None):
    """Channels-last path.  x_nhwc: (N, H, W, C), weight: (C, H, W) -> (N, C).

    Preferred TPU layout (C on lanes, HW reduce on sublanes): avoids the
    49->128 lane padding, keeps the reduce off the XLU, lane-dense output.
    Use it when the producer emits NHWC; do not pay a standalone transpose."""
    assert x_nhwc.ndim == 4, "x must been 4 dimensions, but got " + str(x_nhwc.ndim)
    N, H, W, C = x_nhwc.shape
    HW = H * W
    assert weight.shape == (C, H, W)

    x_flat = x_nhwc.reshape(N, HW, C)                            # metadata-only
    w_flat = weight.reshape(C, HW).T.astype(x_nhwc.dtype)        # (HW, C), tiny

    tn, vmem_limit = _plan(N, C, HW, C, x_nhwc.dtype, target_block_bytes)
    grid = (pl.cdiv(N, tn),)

    itemsize = np.dtype(x_nhwc.dtype).itemsize
    cost = pl.CostEstimate(
        flops=2 * N * C * HW,
        transcendentals=0,
        bytes_accessed=N * C * HW * itemsize + C * HW * itemsize + N * C * itemsize,
    )

    return pl.pallas_call(
        _dct_kernel_nhwc,
        out_shape=jax.ShapeDtypeStruct((N, C), x_nhwc.dtype),
        grid=grid,
        in_specs=[
            pl.BlockSpec((tn, HW, C), lambda i: (i, 0, 0)),
            pl.BlockSpec((HW, C), lambda i: (0, 0)),   # weight resident across grid
        ],
        out_specs=pl.BlockSpec((tn, C), lambda i: (i, 0)),
        compiler_params=pltpu.CompilerParams(
            dimension_semantics=("parallel",),
            vmem_limit_bytes=vmem_limit,
        ),
        cost_estimate=cost,
    )(x_flat, w_flat)


def _reference(x, weight):
    return jnp.sum(
        x.astype(jnp.float32) * weight.astype(jnp.float32)[None, :, :, :],
        axis=(2, 3),
    ).astype(x.dtype)


# ----------------------------------------------------------------------------
# Demo / correctness checks
# ----------------------------------------------------------------------------
if __name__ == "__main__":
    key = jax.random.PRNGKey(0)
    k1, k2, k3 = jax.random.split(key, 3)

    # --- Test 1: module-consistent small shape, f32, NCHW path ---
    N, C, H, W = 2, 4, 16, 16
    mapper_x = [0, 1]
    mapper_y = [0, 2]
    weight = get_dct_filter(H, W, mapper_x, mapper_y, C)      # (C, H, W)
    x = jax.random.normal(k1, (N, C, H, W), dtype=jnp.float32)

    out = jax.block_until_ready(multi_spectral_dct(x, weight))
    ref = _reference(x, weight)
    assert out.shape == (N, C)
    np.testing.assert_allclose(np.asarray(out), np.asarray(ref), rtol=1e-5, atol=1e-5)

    # --- Test 1b: channels-last kernel (transpose here is demo-only; real use
    #     is a producer that already emits NHWC) ---
    x_nhwc = jnp.transpose(x, (0, 2, 3, 1))
    out_cl = jax.block_until_ready(multi_spectral_dct_nhwc(x_nhwc, weight))
    np.testing.assert_allclose(np.asarray(out_cl), np.asarray(ref), rtol=1e-5, atol=1e-5)

    # --- Test 2: bf16 activations (bf16 product, f32 accumulate) ---
    x_bf16 = jax.random.normal(k2, (N, C, H, W), dtype=jnp.float32).astype(jnp.bfloat16)
    out_bf16 = jax.block_until_ready(multi_spectral_dct(x_bf16, weight))
    ref_bf16 = _reference(x_bf16, weight)
    np.testing.assert_allclose(
        np.asarray(out_bf16, dtype=np.float32),
        np.asarray(ref_bf16, dtype=np.float32),
        rtol=3e-2, atol=3e-2,
    )

    # --- Test 3: FCANet-like 7x7 spatial, multi-step grid with partial block,
    #     both layout paths ---
    N3, C3, H3, W3 = 20, 64, 7, 7
    mx3 = [0, 1, 2, 3]
    my3 = [0, 2, 1, 3]
    weight3 = get_dct_filter(H3, W3, mx3, my3, C3)
    x3 = jax.random.normal(k3, (N3, C3, H3, W3), dtype=jnp.float32)
    ref3 = _reference(x3, weight3)

    out3 = jax.block_until_ready(
        multi_spectral_dct(x3, weight3, target_block_bytes=32 * 1024))
    np.testing.assert_allclose(np.asarray(out3), np.asarray(ref3), rtol=1e-5, atol=1e-5)

    out3_cl = jax.block_until_ready(
        multi_spectral_dct_nhwc(jnp.transpose(x3, (0, 2, 3, 1)), weight3,
                                target_block_bytes=32 * 1024))
    np.testing.assert_allclose(np.asarray(out3_cl), np.asarray(ref3), rtol=1e-5, atol=1e-5)

    print("KERNEL_OK")
</pallas_src>

<mosaic_0001>
module attributes {stable_mosaic.version = 11 : i64} {
  func.func @_dct_kernel_nchw(%arg0: i32, %arg1: memref<2x4x256xf32, #tpu.memory_space<vmem>>, %arg2: memref<4x256xf32, #tpu.memory_space<vmem>>, %arg3: memref<2x4xf32, #tpu.memory_space<vmem>>) attributes {dimension_semantics = [#tpu.dimension_semantics<parallel>], iteration_bounds = array<i64: 1>, scalar_prefetch = 0 : i64, scratch_operands = 0 : i64, tpu.core_type = #tpu.core_type<tc>, window_params = [{transform_indices = @transform_0, window_bounds = array<i64: 2, 4, 256>}, {pipeline_mode = #tpu.pipeline_mode<synchronous>, transform_indices = @transform_1, window_bounds = array<i64: 4, 256>}, {transform_indices = @transform_2, window_bounds = array<i64: 2, 4>}]} {
    %c0 = arith.constant 0 : index
    %c0_0 = arith.constant 0 : index
    %c0_1 = arith.constant 0 : index
    %0 = vector.load %arg1[%c0, %c0_0, %c0_1] : memref<2x4x256xf32, #tpu.memory_space<vmem>>, vector<2x4x256xf32>
    %c0_2 = arith.constant 0 : index
    %c0_3 = arith.constant 0 : index
    %1 = vector.load %arg2[%c0_2, %c0_3] : memref<4x256xf32, #tpu.memory_space<vmem>>, vector<4x256xf32>
    %2 = vector.shape_cast %1 : vector<4x256xf32> to vector<1x4x256xf32>
    %3 = vector.broadcast %2 : vector<1x4x256xf32> to vector<2x4x256xf32>
    %4 = arith.mulf %0, %3 : vector<2x4x256xf32>
    %cst = arith.constant dense<0.000000e+00> : vector<2x4xf32>
    %5 = vector.multi_reduction <add>, %4, %cst [2] : vector<2x4x256xf32> to vector<2x4xf32>
    %c0_4 = arith.constant 0 : index
    %c0_5 = arith.constant 0 : index
    %6 = vector.load %arg3[%c0_4, %c0_5] : memref<2x4xf32, #tpu.memory_space<vmem>>, vector<2x4xf32>
    tpu.vector_store %arg3[%c0_4, %c0_5], %5 {strides = array<i32>} : memref<2x4xf32, #tpu.memory_space<vmem>>, vector<2x4xf32>,
    return
  }
  func.func @transform_0(%arg0: i32) -> (i32, i32, i32) {
    %c0_i32 = arith.constant 0 : i32
    %c0_i32_0 = arith.constant 0 : i32
    %c0_i32_1 = arith.constant 0 : i32
    return %arg0, %c0_i32, %c0_i32_0 : i32, i32, i32
  }
  func.func @transform_1(%arg0: i32) -> (i32, i32) {
    %c0_i32 = arith.constant 0 : i32
    %c0_i32_0 = arith.constant 0 : i32
    %c0_i32_1 = arith.constant 0 : i32
    return %c0_i32, %c0_i32_0 : i32, i32
  }
  func.func @transform_2(%arg0: i32) -> (i32, i32) {
    %c0_i32 = arith.constant 0 : i32
    %c0_i32_0 = arith.constant 0 : i32
    return %arg0, %c0_i32 : i32, i32
  }
}

</mosaic_0001>

<bundles_post_ra>
// kernel: tpu_custom_call.1
= control target key start
LH: loop header
LB: loop body
LE: loop exit
PB: predicated region body
PF: predicated region fallthrough
CT: control target
= control target key end

     0   :  { %7 = vsyncpa [#allocation3], 0  ;;  %s226_s0 = inlined_call_operand.hbm [shape: f32[2,4,256], index: 0, kind: input, shape index: {}]   ;;  %s227_s1 = inlined_call_operand.hbm [shape: f32[4,256], index: 1, kind: input, shape index: {}]   ;;  %s228_s2 = inlined_call_operand.hbm [shape: f32[2,4], index: 2, kind: output, shape index: {}]  }
   0x1   :  { %8 = vsyncpa [#allocation6], 0 }
   0x2   :  { %9 = vsyncpa [#allocation4], 0  ;;  %s170_s9 = smov [#allocation2]   ;;  %s98_s13 = scalar_lea.hbm %s226_s0, 256 }
   0x3   :  { %s15_s10 = sshll.u32 %s170_s9, 4  ;;  %p99_p0 = scmp.ne.s32.totalorder %s226_s0, %s98_s13  ;;  %s16_s10 = int_to_ptr.vmem [resolvable:$true] %s15_s10 }
   0x4   :  { %p102_p1 = scmp.lt.u32.totalorder %s98_s13, %s226_s0 }
   0x6   :  { %p104_p2 = pnand %p102_p1, %p99_p0 }
   0x8   :  { %107 = shalt.err (!%p104_p2)
}
   0x9   :  { %s108_s18 = scalar_lea.vmem %s16_s10, 256  ;;  %p113_p4 = scmp.lt.s32.totalorder %s16_s10, %s16_s10 }
   0xa   :  { %p109_p3 = scmp.ne.s32.totalorder %s16_s10, %s108_s18  ;;  %p114_p5 = scmp.lt.s32.totalorder %s108_s18, %s108_s18 }
   0xc   :  { %p115_p6 = por %p114_p5, %p113_p4 }
   0xe   :  { %p116_p7 = pnand %p115_p6, %p109_p3 }
  0x10   :  { %119 = shalt.err (!%p116_p7)
}
  0x11   :  { %s171_s19 = smov 128   ;;  %s172_s20 = smov 8  }
  0x12   :  { %21 = dma.hbm_to_vmem [thread:$0]  %s226_s0, 256, %s16_s10, [#allocation3], %s171_s19, %s171_s19, %s172_s20  }
  0x13   :  { %s173_s23 = smov [#allocation5]   ;;  %s120_s27 = scalar_lea.hbm %s227_s1, 128 }
  0x14   :  { %s28_s24 = sshll.u32 %s173_s23, 4  ;;  %p121_p8 = scmp.ne.s32.totalorder %s227_s1, %s120_s27  ;;  %s29_s24 = int_to_ptr.vmem [resolvable:$true] %s28_s24 }
  0x15   :  { %p124_p9 = scmp.lt.u32.totalorder %s120_s27, %s227_s1 }
  0x17   :  { %p126_p10 = pnand %p124_p9, %p121_p8 }
  0x19   :  { %129 = shalt.err (!%p126_p10)
}
  0x1a   :  { %s130_s4 = scalar_lea.vmem %s29_s24, 128  ;;  %p135_p12 = scmp.lt.s32.totalorder %s29_s24, %s29_s24 }
  0x1b   :  { %p131_p11 = scmp.ne.s32.totalorder %s29_s24, %s130_s4  ;;  %p136_p13 = scmp.lt.s32.totalorder %s130_s4, %s130_s4 }
  0x1d   :  { %p137_p0 = por %p136_p13, %p135_p12 }
  0x1f   :  { %p138_p1 = pnand %p137_p0, %p131_p11 }
  0x21   :  { %141 = shalt.err (!%p138_p1)
}
  0x22   :  { %31 = dma.hbm_to_vmem [thread:$0]  %s227_s1, 128, %s29_s24, [#allocation6]  }
  0x23   :  { %164 = dma.done.wait [#allocation3], 256  }
  0x24   :  { %165 = vsyncadd [#allocation3], 4294967040 }
  0x25   :  { %166 = dma.done.wait [#allocation6], 128  }
  0x26   :  { %167 = vsyncadd [#allocation6], 4294967168  ;;  %v38_v0 = vld [vmem:[#allocation2] sm:$0xff]  ;;  %v40_v1 = vld [vmem:[#allocation5] sm:$0xff]  ;;  %vm49_vm0 = vcmask 1043456   ;;  %v62_v13 = vlaneseq  ;;  %s174_s1 = smov [#allocation7]  }
  0x27   :  { %v39_v2 = vld [vmem:[#allocation2 + $0x8] sm:$0xff]  ;;  %v41_v3 = vmul.f32 %v40_v1, %v38_v0  ;;  %s83_s6 = sshll.u32 %s174_s1, 4  ;;  %vm72_vm1 = vcmask 1041409   ;;  %vm75_vm2 = vcmask 25600   ;;  %s84_s6 = int_to_ptr.vmem [resolvable:$true] %s83_s6 }
  0x28   :  { %v42_v4 = vmul.f32 %v40_v1, %v39_v2  ;;  %v63_v14 = vand.u32 127, %v62_v13  ;;  %v65_v15 = vshrl.u32 %v62_v13, 7  ;;  %s142_s7 = scalar_lea.vmem %s84_s6, 32  ;;  %p147_p3 = scmp.lt.s32.totalorder %s84_s6, %s84_s6 }
  0x29   :  { %v45_v5 = vcombine.high %v41_v3, %v41_v3  ;;  %v50_v6 = vsel %vm49_vm0, %v41_v3, 0.0  ;;  %p143_p2 = scmp.ne.s32.totalorder %s84_s6, %s142_s7  ;;  %p148_p4 = scmp.lt.s32.totalorder %s142_s7, %s142_s7 }
  0x2a   :  { %v46_v7 = vcombine.high %v42_v4, %v42_v4  ;;  %v55_v9 = vsel %vm49_vm0, %v42_v4, 0.0  ;;  %v66_v17 = vsub.s32 %v63_v14, %v65_v15 }
  0x2b   :  { %v51_v8 = vsel %vm49_vm0, %v45_v5, 0.0  ;;  %p149_p5 = por %p148_p4, %p147_p3 }
  0x2c   :  { %v56_v10 = vsel %vm49_vm0, %v46_v7, 0.0  ;;  %v52_v11 = vadd.f32 %v51_v8, %v50_v6 }
  0x2d   :  { %v57_v12 = vadd.f32 %v56_v10, %v55_v9  ;;  %p150_p6 = pnand %p149_p5, %p143_p2 }
  0x2e   :  { %53 = vadd.xlane.f32.xlu0 %v52_v11 }
  0x32   :  { %58 = vadd.xlane.f32.xlu0 %v57_v12 }
  0xbb   :  { %v54_v16 = vpop.xlane.xlu0 %53 }
  0xbc   :  { %v67_v19 = vrot.slane %v54_v16, %v66_v17 }
  0xbf   :  { %v59_v18 = vpop.xlane.xlu0 %58 }
  0xc0   :  { %v71_v20 = vrot.slane %v59_v18, %v66_v17 }
  0xc2   :  { %v73_v21 = vsel %vm72_vm1, %v71_v20, %v67_v19 }
  0xc3   :  { %76 = vst.msk [vmem:[#allocation7] sm:$0x3] %vm75_vm2, %v73_v21 }
  0xc4   :  { %153 = shalt.err (!%p150_p6)
}
  0xc5   :  { %s154_s10 = scalar_lea.hbm %s228_s2, 32 }
  0xc6   :  { %p155_p7 = scmp.ne.s32.totalorder %s228_s2, %s154_s10  ;;  %p158_p8 = scmp.lt.u32.totalorder %s154_s10, %s228_s2 }
  0xc8   :  { %p160_p9 = pnand %p158_p8, %p155_p7 }
  0xca   :  { %163 = shalt.err (!%p160_p9)
}
  0xcb   :  { %86 = dma.vmem_to_hbm [thread:$0]  %s84_s6, 32, %s228_s2, [#allocation4]  }
  0xcc   :  { %168 = dma.done.wait [#allocation4], 32  }
  0xcd   :  { %169 = vsyncadd [#allocation4], 4294967264 }
  0xce   :  { %90 = vsyncpa [#allocation3], 1 }
  0xcf   :  { %91 = vsyncpa [#allocation6], 1 }
  0xd0   :  { %92 = vsyncpa [#allocation4], 1 }

</bundles_post_ra>
